<compile_context>
chip_gen: v6e
topology: v6e:2x2x1
jax: 0.10.0
libtpu: 0.0.40
codegen_flags: <defaults>
</compile_context>

<pallas_src>
import jax
import jax.numpy as jnp
from jax.experimental import pallas as pl
from jax.experimental.pallas import tpu as pltpu

INPUT_SIZE = 586
HIDDEN1 = 128
HIDDEN2 = 64
OUTPUT_SIZE = 2

PADDED_HIDDEN2 = 128   # lane-dense h2
PADDED_OUTPUT = 128    # lane-dense final store
MIN_TILE = 16          # bf16 packs 16 rows per sublane group
MAX_BATCH_TILE = 1024  # DMA-efficient tile, still small in VMEM


def _round_up(n, m):
    return ((n + m - 1) // m) * m


def _choose_tile(batch):
    # Prefer >=2 grid steps (v7x dual-TC) while keeping tiles large
    # (>=85% HBM roofline needs ~512-1024 rows) and 16-row aligned.
    half = _round_up(pl.cdiv(batch, 2), MIN_TILE)
    return int(min(MAX_BATCH_TILE, max(MIN_TILE, half)))


def dqn_kernel(x_ref, w1_ref, b1_ref, w2_ref, b2_ref, w3_ref, b3_ref, o_ref):
    # fc1 + relu: cast activations to bf16 in-kernel, f32 MXU accumulation.
    x = x_ref[...].astype(jnp.bfloat16)
    h1 = jnp.dot(x, w1_ref[...], preferred_element_type=jnp.float32)
    h1 = jnp.maximum(h1 + b1_ref[...], 0.0)
    # fc2 + relu (HIDDEN2 padded to 128 lanes; padded cols stay exactly 0).
    h2 = jnp.dot(h1.astype(jnp.bfloat16), w2_ref[...],
                 preferred_element_type=jnp.float32)
    h2 = jnp.maximum(h2 + b2_ref[...], 0.0)
    # fc3 (no activation), padded to 128 output lanes, stored as bf16.
    out = jnp.dot(h2.astype(jnp.bfloat16), w3_ref[...],
                  preferred_element_type=jnp.float32)
    o_ref[...] = (out + b3_ref[...]).astype(o_ref.dtype)


@jax.jit
def dqn_forward(x, w1p, b1p, w2p, b2p, w3p, b3p):
    """x: (batch, 586) f32. Padded bf16/f32 params from prepare_params()."""
    batch = x.shape[0]
    tb = _choose_tile(batch)
    grid = (pl.cdiv(batch, tb),)

    flops = 2 * batch * (INPUT_SIZE * HIDDEN1
                         + HIDDEN1 * PADDED_HIDDEN2
                         + PADDED_HIDDEN2 * PADDED_OUTPUT)
    bytes_accessed = (
        x.size * 4                                     # f32 activations in
        + (w1p.size + w2p.size + w3p.size) * 2         # bf16 weights
        + (b1p.size + b2p.size + b3p.size) * 4         # f32 biases
        + batch * PADDED_OUTPUT * 2                    # bf16 output
    )

    out = pl.pallas_call(
        dqn_kernel,
        out_shape=jax.ShapeDtypeStruct((batch, PADDED_OUTPUT), jnp.bfloat16),
        grid=grid,
        in_specs=[
            pl.BlockSpec((tb, INPUT_SIZE), lambda i: (i, 0)),            # x tile
            pl.BlockSpec((INPUT_SIZE, HIDDEN1), lambda i: (0, 0)),       # w1 (resident)
            pl.BlockSpec((1, HIDDEN1), lambda i: (0, 0)),                # b1
            pl.BlockSpec((HIDDEN1, PADDED_HIDDEN2), lambda i: (0, 0)),   # w2
            pl.BlockSpec((1, PADDED_HIDDEN2), lambda i: (0, 0)),         # b2
            pl.BlockSpec((PADDED_HIDDEN2, PADDED_OUTPUT), lambda i: (0, 0)),  # w3
            pl.BlockSpec((1, PADDED_OUTPUT), lambda i: (0, 0)),          # b3
        ],
        out_specs=pl.BlockSpec((tb, PADDED_OUTPUT), lambda i: (i, 0)),
        compiler_params=pltpu.CompilerParams(
            dimension_semantics=("parallel",),
            vmem_limit_bytes=32 << 20,
        ),
        cost_estimate=pl.CostEstimate(
            flops=flops, transcendentals=0, bytes_accessed=bytes_accessed),
    )(x, w1p, b1p, w2p, b2p, w3p, b3p)

    # Strip padded output lanes and return f32 Q-values.
    return out[:batch, :OUTPUT_SIZE].astype(jnp.float32)


def prepare_params(w1, b1, w2, b2, w3, b3):
    """One-time padding/casting of master f32 params for the kernel.

    - weights cast to bf16, biases kept f32
    - HIDDEN2 padded 64 -> 128 with zeros (ReLU keeps padded cols at 0)
    - fc3 output padded 2 -> 128 with zeros for a lane-dense store
    """
    w1p = w1.astype(jnp.bfloat16)                                   # (586, 128)
    b1p = b1.reshape(1, HIDDEN1).astype(jnp.float32)

    w2p = jnp.zeros((HIDDEN1, PADDED_HIDDEN2), jnp.bfloat16)
    w2p = w2p.at[:, :HIDDEN2].set(w2.astype(jnp.bfloat16))
    b2p = jnp.zeros((1, PADDED_HIDDEN2), jnp.float32)
    b2p = b2p.at[:, :HIDDEN2].set(b2.reshape(1, HIDDEN2))

    w3p = jnp.zeros((PADDED_HIDDEN2, PADDED_OUTPUT), jnp.bfloat16)
    w3p = w3p.at[:HIDDEN2, :OUTPUT_SIZE].set(w3.astype(jnp.bfloat16))
    b3p = jnp.zeros((1, PADDED_OUTPUT), jnp.float32)
    b3p = b3p.at[:, :OUTPUT_SIZE].set(b3.reshape(1, OUTPUT_SIZE))

    return w1p, b1p, w2p, b2p, w3p, b3p


def init_params(key):
    """Deterministic init mimicking PyTorch nn.Linear default
    (uniform in [-1/sqrt(fan_in), 1/sqrt(fan_in)]). Master weights are f32."""
    def linear(key, fan_in, fan_out):
        kw, kb = jax.random.split(key)
        bound = 1.0 / jnp.sqrt(fan_in)
        # stored as (in, out) so the kernel does x @ W
        w = jax.random.uniform(kw, (fan_in, fan_out), jnp.float32, -bound, bound)
        b = jax.random.uniform(kb, (1, fan_out), jnp.float32, -bound, bound)
        return w, b

    k1, k2, k3 = jax.random.split(key, 3)
    w1, b1 = linear(k1, INPUT_SIZE, HIDDEN1)
    w2, b2 = linear(k2, HIDDEN1, HIDDEN2)
    w3, b3 = linear(k3, HIDDEN2, OUTPUT_SIZE)
    return w1, b1, w2, b2, w3, b3


def reference_forward(x, w1, b1, w2, b2, w3, b3):
    """Reference mimicking the kernel's numerics (bf16 operands, f32 accumulate,
    bf16 output)."""
    f32 = jnp.float32
    bf = lambda a: a.astype(jnp.bfloat16).astype(f32)
    h1 = jnp.maximum(bf(x) @ bf(w1) + b1, 0.0)
    h2 = jnp.maximum(bf(h1) @ bf(w2) + b2, 0.0)
    out = bf(h2) @ bf(w3) + b3
    return out.astype(jnp.bfloat16).astype(f32)


if __name__ == "__main__":
    key = jax.random.PRNGKey(0)
    kx, kp = jax.random.split(key)

    batch = 2
    x = jax.random.normal(kx, (batch, INPUT_SIZE), jnp.float32)
    params = init_params(kp)
    padded_params = prepare_params(*params)   # one-time, outside the hot path

    out = dqn_forward(x, *padded_params)
    out = jax.block_until_ready(out)

    ref = reference_forward(x, *params)
    assert out.shape == (batch, OUTPUT_SIZE), out.shape
    assert jnp.allclose(out, ref, atol=2e-2, rtol=2e-2), (out, ref)

    print("KERNEL_OK")
</pallas_src>

<mosaic_0001>
module attributes {stable_mosaic.version = 11 : i64} {
  func.func @dqn_kernel(%arg0: i32, %arg1: memref<16x586xf32, #tpu.memory_space<vmem>>, %arg2: memref<586x128xbf16, #tpu.memory_space<vmem>>, %arg3: memref<1x128xf32, #tpu.memory_space<vmem>>, %arg4: memref<128x128xbf16, #tpu.memory_space<vmem>>, %arg5: memref<1x128xf32, #tpu.memory_space<vmem>>, %arg6: memref<128x128xbf16, #tpu.memory_space<vmem>>, %arg7: memref<1x128xf32, #tpu.memory_space<vmem>>, %arg8: memref<16x128xbf16, #tpu.memory_space<vmem>>) attributes {dimension_semantics = [#tpu.dimension_semantics<parallel>], iteration_bounds = array<i64: 1>, scalar_prefetch = 0 : i64, scratch_operands = 0 : i64, tpu.core_type = #tpu.core_type<tc>, window_params = [{transform_indices = @transform_0, window_bounds = array<i64: 16, 586>}, {pipeline_mode = #tpu.pipeline_mode<synchronous>, transform_indices = @transform_1, window_bounds = array<i64: 586, 128>}, {pipeline_mode = #tpu.pipeline_mode<synchronous>, transform_indices = @transform_2, window_bounds = array<i64: 1, 128>}, {pipeline_mode = #tpu.pipeline_mode<synchronous>, transform_indices = @transform_3, window_bounds = array<i64: 128, 128>}, {pipeline_mode = #tpu.pipeline_mode<synchronous>, transform_indices = @transform_4, window_bounds = array<i64: 1, 128>}, {pipeline_mode = #tpu.pipeline_mode<synchronous>, transform_indices = @transform_5, window_bounds = array<i64: 128, 128>}, {pipeline_mode = #tpu.pipeline_mode<synchronous>, transform_indices = @transform_6, window_bounds = array<i64: 1, 128>}, {transform_indices = @transform_7, window_bounds = array<i64: 16, 128>}]} {
    %c0 = arith.constant 0 : index
    %c0_0 = arith.constant 0 : index
    %0 = vector.load %arg1[%c0, %c0_0] : memref<16x586xf32, #tpu.memory_space<vmem>>, vector<16x586xf32>
    %1 = arith.truncf %0 : vector<16x586xf32> to vector<16x586xbf16>
    %c0_1 = arith.constant 0 : index
    %c0_2 = arith.constant 0 : index
    %2 = vector.load %arg2[%c0_1, %c0_2] : memref<586x128xbf16, #tpu.memory_space<vmem>>, vector<586x128xbf16>
    %cst = arith.constant dense<0.000000e+00> : vector<16x128xf32>
    %3 = tpu.matmul %1, %2, %cst {dimension_numbers = #tpu.dot_dimension_numbers<[1], [0], [0], [1], [0, 0, 1, 1], [], []>} : vector<16x586xbf16>, vector<586x128xbf16>, vector<16x128xf32> -> vector<16x128xf32>
    %c0_3 = arith.constant 0 : index
    %c0_4 = arith.constant 0 : index
    %4 = vector.load %arg3[%c0_3, %c0_4] : memref<1x128xf32, #tpu.memory_space<vmem>>, vector<1x128xf32>
    %5 = vector.broadcast %4 : vector<1x128xf32> to vector<16x128xf32>
    %6 = arith.addf %3, %5 : vector<16x128xf32>
    %cst_5 = arith.constant 0.000000e+00 : f32
    %7 = vector.broadcast %cst_5 : f32 to vector<16x128xf32>
    %8 = arith.maximumf %6, %7 : vector<16x128xf32>
    %9 = arith.truncf %8 : vector<16x128xf32> to vector<16x128xbf16>
    %c0_6 = arith.constant 0 : index
    %c0_7 = arith.constant 0 : index
    %10 = vector.load %arg4[%c0_6, %c0_7] : memref<128x128xbf16, #tpu.memory_space<vmem>>, vector<128x128xbf16>
    %cst_8 = arith.constant dense<0.000000e+00> : vector<16x128xf32>
    %11 = tpu.matmul %9, %10, %cst_8 {dimension_numbers = #tpu.dot_dimension_numbers<[1], [0], [0], [1], [0, 0, 1, 1], [], []>} : vector<16x128xbf16>, vector<128x128xbf16>, vector<16x128xf32> -> vector<16x128xf32>
    %c0_9 = arith.constant 0 : index
    %c0_10 = arith.constant 0 : index
    %12 = vector.load %arg5[%c0_9, %c0_10] : memref<1x128xf32, #tpu.memory_space<vmem>>, vector<1x128xf32>
    %13 = vector.broadcast %12 : vector<1x128xf32> to vector<16x128xf32>
    %14 = arith.addf %11, %13 : vector<16x128xf32>
    %cst_11 = arith.constant 0.000000e+00 : f32
    %15 = vector.broadcast %cst_11 : f32 to vector<16x128xf32>
    %16 = arith.maximumf %14, %15 : vector<16x128xf32>
    %17 = arith.truncf %16 : vector<16x128xf32> to vector<16x128xbf16>
    %c0_12 = arith.constant 0 : index
    %c0_13 = arith.constant 0 : index
    %18 = vector.load %arg6[%c0_12, %c0_13] : memref<128x128xbf16, #tpu.memory_space<vmem>>, vector<128x128xbf16>
    %cst_14 = arith.constant dense<0.000000e+00> : vector<16x128xf32>
    %19 = tpu.matmul %17, %18, %cst_14 {dimension_numbers = #tpu.dot_dimension_numbers<[1], [0], [0], [1], [0, 0, 1, 1], [], []>} : vector<16x128xbf16>, vector<128x128xbf16>, vector<16x128xf32> -> vector<16x128xf32>
    %c0_15 = arith.constant 0 : index
    %c0_16 = arith.constant 0 : index
    %20 = vector.load %arg7[%c0_15, %c0_16] : memref<1x128xf32, #tpu.memory_space<vmem>>, vector<1x128xf32>
    %21 = vector.broadcast %20 : vector<1x128xf32> to vector<16x128xf32>
    %22 = arith.addf %19, %21 : vector<16x128xf32>
    %23 = arith.truncf %22 : vector<16x128xf32> to vector<16x128xbf16>
    %c0_17 = arith.constant 0 : index
    %c0_18 = arith.constant 0 : index
    %24 = vector.load %arg8[%c0_17, %c0_18] : memref<16x128xbf16, #tpu.memory_space<vmem>>, vector<16x128xbf16>
    tpu.vector_store %arg8[%c0_17, %c0_18], %23 {strides = array<i32>} : memref<16x128xbf16, #tpu.memory_space<vmem>>, vector<16x128xbf16>,
    return
  }
  func.func @transform_0(%arg0: i32) -> (i32, i32) {
    %c0_i32 = arith.constant 0 : i32
    %c0_i32_0 = arith.constant 0 : i32
    return %arg0, %c0_i32 : i32, i32
  }
  func.func @transform_1(%arg0: i32) -> (i32, i32) {
    %c0_i32 = arith.constant 0 : i32
    %c0_i32_0 = arith.constant 0 : i32
    %c0_i32_1 = arith.constant 0 : i32
    return %c0_i32, %c0_i32_0 : i32, i32
  }
  func.func @transform_2(%arg0: i32) -> (i32, i32) {
    %c0_i32 = arith.constant 0 : i32
    %c0_i32_0 = arith.constant 0 : i32
    %c0_i32_1 = arith.constant 0 : i32
    return %c0_i32, %c0_i32_0 : i32, i32
  }
  func.func @transform_3(%arg0: i32) -> (i32, i32) {
    %c0_i32 = arith.constant 0 : i32
    %c0_i32_0 = arith.constant 0 : i32
    %c0_i32_1 = arith.constant 0 : i32
    return %c0_i32, %c0_i32_0 : i32, i32
  }
  func.func @transform_4(%arg0: i32) -> (i32, i32) {
    %c0_i32 = arith.constant 0 : i32
    %c0_i32_0 = arith.constant 0 : i32
    %c0_i32_1 = arith.constant 0 : i32
    return %c0_i32, %c0_i32_0 : i32, i32
  }
  func.func @transform_5(%arg0: i32) -> (i32, i32) {
    %c0_i32 = arith.constant 0 : i32
    %c0_i32_0 = arith.constant 0 : i32
    %c0_i32_1 = arith.constant 0 : i32
    return %c0_i32, %c0_i32_0 : i32, i32
  }
  func.func @transform_6(%arg0: i32) -> (i32, i32) {
    %c0_i32 = arith.constant 0 : i32
    %c0_i32_0 = arith.constant 0 : i32
    %c0_i32_1 = arith.constant 0 : i32
    return %c0_i32, %c0_i32_0 : i32, i32
  }
  func.func @transform_7(%arg0: i32) -> (i32, i32) {
    %c0_i32 = arith.constant 0 : i32
    %c0_i32_0 = arith.constant 0 : i32
    return %arg0, %c0_i32 : i32, i32
  }
}

</mosaic_0001>

<bundles_post_ra>
// kernel: dqn_forward.1
= control target key start
LH: loop header
LB: loop body
LE: loop exit
PB: predicated region body
PF: predicated region fallthrough
CT: control target
= control target key end

     0   :  { %12 = vsyncpa [#allocation3], 0  ;;  %s1491_s0 = inlined_call_operand.hbm [shape: f32[2,586], index: 0, kind: input, shape index: {}]   ;;  %s1492_s1 = inlined_call_operand.hbm [shape: bf16[586,128], index: 1, kind: input, shape index: {}]   ;;  %s1493_s2 = inlined_call_operand.vmem [shape: f32[1,128], index: 2, kind: input, shape index: {}]   ;;  %s1494_s3 = inlined_call_operand.hbm [shape: bf16[128,128], index: 3, kind: input, shape index: {}]   ;;  %s1495_s4 = inlined_call_operand.vmem [shape: f32[1,128], index: 4, kind: input, shape index: {}]   ;;  %s1496_s5 = inlined_call_operand.hbm [shape: bf16[128,128], index: 5, kind: input, shape index: {}]   ;;  %s1497_s6 = inlined_call_operand.vmem [shape: f32[1,128], index: 6, kind: input, shape index: {}]   ;;  %s1498_s7 = inlined_call_operand.vmem [shape: bf16[2,128], index: 7, kind: output, shape index: {}]  }
   0x1   :  { %13 = vsyncpa [#allocation5], 0 }
   0x2   :  { %14 = vsyncpa [#allocation8], 0 }
   0x3   :  { %19 = vsyncadd [#allocation3], 1120  ;;  %s1360_s24 = smov [#allocation4]  }
   0x4   :  { %s32_s25 = sshll.u32 %s1360_s24, 4  ;;  %s33_s25 = int_to_ptr.vmem [resolvable:$true] %s32_s25 }
   0x5   :  { %s1282_s26 = scalar_lea.vmem %s33_s25, 4736  ;;  %p1287_p1 = scmp.lt.s32.totalorder %s33_s25, %s33_s25 }
   0x6   :  { %p1283_p0 = scmp.ne.s32.totalorder %s33_s25, %s1282_s26  ;;  %p1288_p2 = scmp.lt.s32.totalorder %s1282_s26, %s1282_s26 }
   0x8   :  { %p1289_p3 = por %p1288_p2, %p1287_p1 }
   0xa   :  { %p1290_p4 = pnand %p1289_p3, %p1283_p0 }
   0xc   :  { %1293 = shalt.err (!%p1290_p4)
}
   0xd   :  { %s1361_s27 = smov 64   ;;  %s1362_s28 = smov 4  }
   0xe   :  { %38 = dma.hbm_to_vmem [thread:$0]  %s1492_s1, 4736, %s33_s25, [#allocation5], %s1361_s27, %s1361_s27, %s1362_s28  }
   0xf   :  { %s1363_s8 = smov [#allocation2]  }
  0x10   :  { %s20_s9 = sshll.u32 %s1363_s8, 4  ;;  %s21_s9 = int_to_ptr.vmem [resolvable:$true] %s20_s9 }
  0x11   :  { %s1302_s10 = scalar_lea.vmem %s21_s9, 160  ;;  %s1306_s11 = scalar_lea.vmem %s21_s9, 1280 }
  0x12   :  { %p1303_p5 = scmp.ne.s32.totalorder %s21_s9, %s1302_s10  ;;  %p1307_p6 = scmp.lt.s32.totalorder %s21_s9, %s21_s9 }
  0x13   :  { %p1308_p7 = scmp.lt.s32.totalorder %s1306_s11, %s1302_s10 }
  0x15   :  { %p1309_p8 = por %p1308_p7, %p1307_p6 }
  0x17   :  { %p1310_p9 = pnand %p1309_p8, %p1303_p5 }
  0x19   :  { %1313 = shalt.err (!%p1310_p9)
}
  0x1a   :  { %s1364_s12 = smov 160   ;;  %s1365_s13 = smov 10  }
  0x1b   :  { %26 = dma.hbm_to_vmem [thread:$0]  %s1491_s0, 160, %s21_s9, [#allocation3], %s1364_s12, %s1364_s12, %s1365_s13  }
  0x1c   :  { %s1366_s16 = smov [#allocation6]   ;;  %s1367_s1 = smov [#allocation7]  }
  0x1d   :  { %s46_s17 = sshll.u32 %s1366_s16, 4  ;;  %s60_s18 = sshll.u32 %s1367_s1, 4  ;;  %s47_s17 = int_to_ptr.vmem [resolvable:$true] %s46_s17  ;;  %s61_s18 = int_to_ptr.vmem [resolvable:$true] %s60_s18 }
  0x1e   :  { %s1322_s19 = scalar_lea.vmem %s47_s17, 1024  ;;  %p1327_p11 = scmp.lt.s32.totalorder %s47_s17, %s47_s17 }
  0x1f   :  { %p1323_p10 = scmp.ne.s32.totalorder %s47_s17, %s1322_s19  ;;  %p1328_p12 = scmp.lt.s32.totalorder %s1322_s19, %s1322_s19 }
  0x21   :  { %p1329_p13 = por %p1328_p12, %p1327_p11 }
  0x23   :  { %p1330_p0 = pnand %p1329_p13, %p1323_p10 }
  0x25   :  { %1333 = shalt.err (!%p1330_p0)
}
  0x26   :  { %52 = dma.hbm_to_vmem [thread:$0]  %s1494_s3, 1024, %s47_s17, [#allocation5], %s1361_s27, %s1361_s27, %s1362_s28  }
  0x27   :  { %s1342_s0 = scalar_lea.vmem %s61_s18, 1024  ;;  %p1347_p2 = scmp.lt.s32.totalorder %s61_s18, %s61_s18 }
  0x28   :  { %p1343_p1 = scmp.ne.s32.totalorder %s61_s18, %s1342_s0  ;;  %p1348_p3 = scmp.lt.s32.totalorder %s1342_s0, %s1342_s0 }
  0x2a   :  { %p1349_p4 = por %p1348_p3, %p1347_p2 }
  0x2c   :  { %p1350_p5 = pnand %p1349_p4, %p1343_p1 }
  0x2e   :  { %1353 = shalt.err (!%p1350_p5)
}
  0x2f   :  { %66 = dma.hbm_to_vmem [thread:$0]  %s1496_s5, 1024, %s61_s18, [#allocation8], %s1361_s27, %s1361_s27, %s1362_s28  }
  0x30   :  { %1354 = dma.done.wait [#allocation3], 1280  }
  0x31   :  { %1355 = vsyncadd [#allocation3], 4294966016 }
  0x32   :  { %1356 = dma.done.wait [#allocation5], 5760  }
  0x33   :  { %1357 = vsyncadd [#allocation5], 4294961536 }
  0x34   :  { %1358 = dma.done.wait [#allocation8], 1024  }
  0x35   :  { %1359 = vsyncadd [#allocation8], 4294966272  ;;  %v1205_v0 = vld [vmem:[#allocation4 + $0x78] sm:$0xff]   ;;  %v1209_v4 = vld [vmem:[#allocation4 + $0x70] sm:$0xff]   ;;  %v1368_v24 = vmov 1983009808   ;;  %v121_v26 = vlaneseq }
  0x36   :  { %v1206_v1 = vld [vmem:[#allocation4 + $0x38] sm:$0xff]   ;;  %1071 = vmatprep.subr.bf16.mxu0 %v1205_v0  ;;  %v1210_v5 = vld [vmem:[#allocation4 + $0x30] sm:$0xff]   ;;  %v1213_v8 = vld [vmem:[#allocation4 + $0x68] sm:$0xff]   ;;  %v119_v25 = vunpack.c.l.s4 %v1368_v24  ;;  %v1369_v37 = vmov 0.0   ;;  %vm541_vm0 = vcmask 1044480   ;;  %vm1370_vm1 = vmmov 0  }
  0x37   :  { %v1207_v2 = vld [vmem:[#allocation4 + $0xf8] sm:$0xff]   ;;  %1072 = vmatpush3.bf16.msra.mxu0 %v1206_v1  ;;  %v1211_v6 = vld [vmem:[#allocation4 + $0xf0] sm:$0xff]   ;;  %v1214_v9 = vld [vmem:[#allocation4 + $0x28] sm:$0xff]   ;;  %v1433_v32 = vshrl.u32 %v121_v26, 7  ;;  %vm537_vm2 = vcmask 605184  }
  0x38   :  { %v1208_v3 = vld [vmem:[#allocation4 + $0xb8] sm:$0xff]   ;;  %1093 = vmatprep.subr.bf16.mxu1 %v1207_v2  ;;  %1073 = vmatprep.subr.bf16.mxu0 %v1209_v4  ;;  %v1212_v7 = vld [vmem:[#allocation4 + $0xb0] sm:$0xff]   ;;  %v1215_v10 = vld [vmem:[#allocation4 + $0xe8] sm:$0xff]   ;;  %v120_v31 = vunpack.c.0.s8 %v119_v25 }
  0x39   :  { %1094 = vmatpush3.bf16.msra.mxu1 %v1208_v3  ;;  %v1216_v11 = vld [vmem:[#allocation4 + $0xa8] sm:$0xff]   ;;  %v1217_v12 = vld [vmem:[#allocation4 + $0x60] sm:$0xff]   ;;  %v1221_v16 = vld [vmem:[#allocation4 + $0x58] sm:$0xff]  }
  0x3a   :  { %1095 = vmatprep.subr.bf16.mxu1 %v1211_v6  ;;  %v1218_v13 = vld [vmem:[#allocation4 + $0x20] sm:$0xff]   ;;  %v1222_v17 = vld [vmem:[#allocation4 + $0x18] sm:$0xff]   ;;  %v1225_v20 = vld [vmem:[#allocation4 + $0x50] sm:$0xff]   ;;  %v1436_v36 = vsub.s32 %v120_v31, %v1433_v32 }
  0x3b   :  { %1074 = vmatpush3.bf16.msra.mxu0 %v1210_v5  ;;  %v1219_v14 = vld [vmem:[#allocation4 + $0xe0] sm:$0xff]   ;;  %v1223_v18 = vld [vmem:[#allocation4 + $0xd8] sm:$0xff]   ;;  %v1226_v21 = vld [vmem:[#allocation4 + $0x10] sm:$0xff]  }
  0x3c   :  { %1075 = vmatprep.subr.bf16.mxu0 %v1213_v8  ;;  %v1220_v15 = vld [vmem:[#allocation4 + $0xa0] sm:$0xff]   ;;  %v1224_v19 = vld [vmem:[#allocation4 + $0x98] sm:$0xff]   ;;  %v1227_v22 = vld [vmem:[#allocation4 + $0xd0] sm:$0xff]  }
  0x3d   :  { %1096 = vmatpush3.bf16.msra.mxu1 %v1212_v7  ;;  %v1228_v23 = vld [vmem:[#allocation4 + $0x90] sm:$0xff]   ;;  %v1229_v27 = vld [vmem:[#allocation4 + $0x48] sm:$0xff]   ;;  %v1233_v33 = vld [vmem:[#allocation4 + $0x40] sm:$0xff]  }
  0x3e   :  { %1097 = vmatprep.subr.bf16.mxu1 %v1215_v10  ;;  %v1230_v28 = vld [vmem:[#allocation4 + $0x8] sm:$0xff]   ;;  %v1234_v34 = vld [vmem:[#allocation4] sm:$0xff]   ;;  %v1236_v38 = vld [vmem:[#allocation2] ss:$10 sps:$4 sm:$0xff]  }
  0x3f   :  { %1076 = vmatpush3.bf16.msra.mxu0 %v1214_v9  ;;  %v1231_v29 = vld [vmem:[#allocation4 + $0xc8] sm:$0xff]   ;;  %v1235_v35 = vld [vmem:[#allocation4 + $0xc0] sm:$0xff]   ;;  %v124_v42 = vrot.slane %v1236_v38, %v1436_v36  ;;  %v1248_v50 = vld [vmem:[#allocation2 + $0x40] ss:$10 sps:$4 sm:$0xff]  }
  0x40   :  { %1077 = vmatprep.subr.bf16.mxu0 %v1217_v12  ;;  %v1232_v30 = vld [vmem:[#allocation4 + $0x88] sm:$0xff]   ;;  %v1240_v40 = vld [vmem:[#allocation2 + $0x28] ss:$10 sps:$4 sm:$0xff]   ;;  %v1245_v47 = vld [vmem:[#allocation2 + $0x4] ss:$10 sps:$4 sm:$0xff]   ;;  %v198_v59 = vrot.slane %v1248_v50, %v1436_v36 }
  0x41   :  { %1098 = vmatpush3.bf16.msra.mxu1 %v1216_v11  ;;  %v1238_v39 = vld [vmem:[#allocation2 + $0x14] ss:$10 sps:$4 sm:$0xff]   ;;  %v177_v45 = vrot.slane %v1240_v40, %v1436_v36  ;;  %v1246_v48 = vld [vmem:[#allocation2 + $0x18] ss:$10 sps:$4 sm:$0xff]   ;;  %v131_v56 = vrot.slane %v1245_v47, %v1436_v36  ;;  %v1250_v3 = vld [vmem:[#allocation4 + $0x118] sm:$0xff]  }
  0x42   :  { %1099 = vmatprep.subr.bf16.mxu1 %v1219_v14  ;;  %v1242_v41 = vld [vmem:[#allocation2 + $0x3c] ss:$10 sps:$4 sm:$0xff]   ;;  %v1244_v43 = vld [vmem:[#allocation4 + $0x80] sm:$0xff]   ;;  %v138_v44 = vrot.slane %v1238_v39, %v1436_v36  ;;  %v145_v57 = vrot.slane %v1246_v48, %v1436_v36  ;;  %v1257_v10 = vld [vmem:[#allocation2 + $0x44] ss:$10 sps:$4 sm:$0x33]  }
  0x43   :  { %1078 = vmatpush3.bf16.msra.mxu0 %v1218_v13  ;;  %v191_v46 = vrot.slane %v1242_v41, %v1436_v36  ;;  %v1247_v49 = vld [vmem:[#allocation2 + $0x2c] ss:$10 sps:$4 sm:$0xff]   ;;  %v1249_v55 = vld [vmem:[#allocation4 + $0x120] sm:$0x1f]   ;;  %v1251_v8 = vld [vmem:[#allocation4 + $0x110] sm:$0xff]  }
  0x44   :  { %1079 = vmatprep.subr.bf16.mxu0 %v1221_v16  ;;  %v147_v51 = vcombine.high %v124_v42, %v138_v44  ;;  %v146_v53 = vcombine.low %v124_v42, %v138_v44  ;;  %v184_v58 = vrot.slane %v1247_v49, %v1436_v36  ;;  %v543_v62 = vsel %vm541_vm0, %v1249_v55, 0  ;;  %v1254_v6 = vld [vmem:[#allocation2 + $0x8] ss:$10 sps:$4 sm:$0x33]   ;;  %v1252_v11 = vld [vmem:[#allocation4 + $0x108] sm:$0xff]   ;;  %v1264_v26 = vld [vmem:[#allocation6 + $0x8] sm:$0xff]  }
  0x45   :  { %1100 = vmatpush3.bf16.msra.mxu1 %v1220_v15  ;;  %v200_v52 = vcombine.high %v177_v45, %v191_v46  ;;  %v199_v54 = vcombine.low %v177_v45, %v191_v46  ;;  %v149_v63 = vcombine.high %v131_v56, %v145_v57  ;;  %v148_v1 = vcombine.low %v131_v56, %v145_v57  ;;  %v1255_v7 = vld [vmem:[#allocation2 + $0x1c] ss:$10 sps:$4 sm:$0x33]   ;;  %v1256_v9 = vld [vmem:[#allocation2 + $0x30] ss:$10 sps:$4 sm:$0x33]  }
  0x46   :  { %1101 = vmatprep.subr.bf16.mxu1 %v1223_v18  ;;  %v202_v0 = vcombine.high %v184_v58, %v198_v59  ;;  %v201_v2 = vcombine.low %v184_v58, %v198_v59  ;;  %v158_v12 = vrot.slane %v1254_v6, %v1436_v36  ;;  %v165_v13 = vrot.slane %v1255_v7, %v1436_v36  ;;  %v1253_v16 = vld [vmem:[#allocation4 + $0x100] sm:$0xff]   ;;  %v1263_v25 = vld [vmem:[#allocation6 + $0x10] sm:$0xff]   ;;  %v1269_v31 = vld [vmem:[#allocation7 + $0x20] sm:$0xff]  }
  0x47   :  { %1080 = vmatpush3.bf16.msra.mxu0 %v1222_v17  ;;  %v231_v60 = vpack.c.bf16 %v200_v52, %v147_v51  ;;  %v230_v61 = vpack.c.bf16 %v199_v54, %v146_v53  ;;  %v211_v14 = vrot.slane %v1256_v9, %v1436_v36  ;;  %v218_v15 = vrot.slane %v1257_v10, %v1436_v36  ;;  %v1262_v24 = vld [vmem:[#allocation6 + $0x18] sm:$0xff]  }
  0x48   :  { %1081 = vmatprep.subr.bf16.mxu0 %v1225_v20  ;;  %v233_v4 = vpack.c.bf16 %v202_v0, %v149_v63  ;;  %v232_v5 = vpack.c.bf16 %v201_v2, %v148_v1  ;;  %v166_v17 = vcombine.low %v158_v12, %v165_v13  ;;  %v1258_v20 = vld [vmem:[#allocation6 + $0x38] sm:$0xff]   ;;  %v1273_v63 = vld [vmem:[#allocation7] sm:$0xff]   ;;  %v1048_v0 = vld [vmem:[%s1495_s4] ss:$0 sm:$0xff]  ;;  %v1371_v10 = vmov 1966171168  }
  0x49   :  { %1102 = vmatpush3.bf16.msra.mxu1 %v1224_v19  ;;  %577 = vmatprep.mubr.bf16.mxu0 %v231_v60  ;;  %v219_v18 = vcombine.low %v211_v14, %v218_v15  ;;  %v1057_v13 = vld [vmem:[%s1497_s6] ss:$0 sm:$0xff] }
  0x4a   :  { %1103 = vmatprep.subr.bf16.mxu1 %v1227_v22  ;;  %618 = vmatprep.mubr.bf16.mxu1 %v233_v4  ;;  %v1260_v22 = vld [vmem:[#allocation6 + $0x28] sm:$0xff]  }
  0x4b   :  { %1082 = vmatpush3.bf16.msra.mxu0 %v1226_v21  ;;  %v234_v19 = vpack.c.bf16 %v219_v18, %v166_v17  ;;  %v1259_v21 = vld [vmem:[#allocation6 + $0x30] sm:$0xff]  }
  0x4c   :  { %1083 = vmatprep.subr.bf16.mxu0 %v1229_v27  ;;  %v1265_v27 = vld [vmem:[#allocation6] sm:$0xff]  }
  0x4d   :  { %1104 = vmatpush3.bf16.msra.mxu1 %v1228_v23  ;;  %v1261_v23 = vld [vmem:[#allocation6 + $0x20] sm:$0xff]  }
  0x4e   :  { %1105 = vmatprep.subr.bf16.mxu1 %v1231_v29  ;;  %v1267_v29 = vld [vmem:[#allocation7 + $0x30] sm:$0xff]  }
  0x4f   :  { %1084 = vmatpush3.bf16.msra.mxu0 %v1230_v28  ;;  %v1266_v28 = vld [vmem:[#allocation7 + $0x38] sm:$0xff]  }
  0x50   :  { %1085 = vmatprep.subr.bf16.mxu0 %v1233_v33  ;;  %v1270_v33 = vld [vmem:[#allocation7 + $0x18] sm:$0xff]  }
  0x51   :  { %1106 = vmatpush3.bf16.msra.mxu1 %v1232_v30  ;;  %v1268_v30 = vld [vmem:[#allocation7 + $0x28] sm:$0xff]  }
  0x52   :  { %1107 = vmatprep.subr.bf16.mxu1 %v1235_v35 }
  0x53   :  { %1086 = vmatpush3.bf16.msra.mxu0 %v1234_v34 }
  0x54   :  { %1139 = vmatprep.subr.bf16.mxu0 %v1369_v37 }
  0x55   :  { %1108 = vmatpush3.bf16.msra.mxu1 %v1244_v43  ;;  %v1009_v43 = vld [vmem:[%s1493_s2] ss:$0 sm:$0xff] }
  0x56   :  { %1153 = vmatprep.subr.bf16.mxu1 %v1369_v37  ;;  %578 = vmatmul.mubr.bf16.vlgmr.msra.gmra.mxu0 %v230_v61  ;;  %v1271_v61 = vld [vmem:[#allocation7 + $0x10] sm:$0xff]  }
  0x57   :  { %1140 = vmatpush3.bf16.msra.mxu0 %v543_v62  ;;  %1149 = vmatprep.mubr.msk.bf16.mxu0 %vm1370_vm1, %v1369_v37  ;;  %v1272_v62 = vld [vmem:[#allocation7 + $0x8] sm:$0xff]  }
  0x58   :  { %1141 = vmatprep.subr.bf16.mxu0 %v1369_v37  ;;  %619 = vmatmul.mubr.bf16.vlgmr.msra.gmra.mxu1 %v232_v5 }
  0x59   :  { %1169 = vmatprep.mubr.msk.bf16.mxu1 %vm1370_vm1, %v1369_v37  ;;  %1154 = vmatpush3.bf16.msra.mxu1 %v1258_v20 }
  0x5a   :  { %1155 = vmatprep.subr.bf16.mxu1 %v1369_v37 }
  0x5b   :  { %1142 = vmatpush3.bf16.msra.mxu0 %v1250_v3 }
  0x5c   :  { %1143 = vmatprep.subr.bf16.mxu0 %v1369_v37 }
  0x5d   :  { %1156 = vmatpush3.bf16.msra.mxu1 %v1259_v21 }
  0x5e   :  { %1157 = vmatprep.subr.bf16.mxu1 %v1369_v37 }
  0x5f   :  { %1144 = vmatpush3.bf16.msra.mxu0 %v1251_v8 }
  0x60   :  { %1145 = vmatprep.subr.bf16.mxu0 %v1369_v37 }
  0x61   :  { %1158 = vmatpush3.bf16.msra.mxu1 %v1260_v22 }
  0x62   :  { %1159 = vmatprep.subr.bf16.mxu1 %v1369_v37 }
  0x63   :  { %1146 = vmatpush3.bf16.msra.mxu0 %v1252_v11  ;;  %v902_v11 = vunpack.c.l.s4 %v1371_v10 }
  0x64   :  { %1147 = vmatprep.subr.bf16.mxu0 %v1369_v37 }
  0x65   :  { %1160 = vmatpush3.bf16.msra.mxu1 %v1261_v23 }
  0x66   :  { %1161 = vmatprep.subr.bf16.mxu1 %v1369_v37 }
  0x67   :  { %1148 = vmatpush3.bf16.msra.mxu0 %v1253_v16 }
  0x68   :  { %1173 = vmatprep.subr.bf16.mxu0 %v1369_v37 }
  0x69   :  { %1162 = vmatpush3.bf16.msra.mxu1 %v1262_v24 }
  0x6a   :  { %1150 = vmatmul.mubr.msk.bf16.vlgmr.msra.gmra.mxu0 %vm537_vm2, %v234_v19  ;;  %1163 = vmatprep.subr.bf16.mxu1 %v1369_v37 }
  0x6b   :  { %1189 = vmatprep.mubr.msk.bf16.mxu0 %vm1370_vm1, %v1369_v37  ;;  %1174 = vmatpush3.bf16.msra.mxu0 %v1266_v28 }
  0x6c   :  { %1175 = vmatprep.subr.bf16.mxu0 %v1369_v37 }
  0x6d   :  { %1164 = vmatpush3.bf16.msra.mxu1 %v1263_v25 }
  0x6e   :  { %1165 = vmatprep.subr.bf16.mxu1 %v1369_v37 }
  0x6f   :  { %1176 = vmatpush3.bf16.msra.mxu0 %v1267_v29 }
  0x70   :  { %1177 = vmatprep.subr.bf16.mxu0 %v1369_v37 }
  0x71   :  { %1166 = vmatpush3.bf16.msra.mxu1 %v1264_v26 }
  0x72   :  { %1167 = vmatprep.subr.bf16.mxu1 %v1369_v37 }
  0x73   :  { %1178 = vmatpush3.bf16.msra.mxu0 %v1268_v30 }
  0x74   :  { %1179 = vmatprep.subr.bf16.mxu0 %v1369_v37 }
  0x75   :  { %1168 = vmatpush3.bf16.msra.mxu1 %v1265_v27 }
  0x77   :  { %1180 = vmatpush3.bf16.msra.mxu0 %v1269_v31 }
  0x78   :  { %1181 = vmatprep.subr.bf16.mxu0 %v1369_v37 }
  0x7b   :  { %1182 = vmatpush3.bf16.msra.mxu0 %v1270_v33 }
  0x7c   :  { %1183 = vmatprep.subr.bf16.mxu0 %v1369_v37 }
  0x7f   :  { %1184 = vmatpush3.bf16.msra.mxu0 %v1271_v61 }
  0x80   :  { %1185 = vmatprep.subr.bf16.mxu0 %v1369_v37 }
  0x83   :  { %1186 = vmatpush3.bf16.msra.mxu0 %v1272_v62 }
  0x84   :  { %1187 = vmatprep.subr.bf16.mxu0 %v1369_v37  ;;  %v903_v37 = vunpack.c.0.s8 %v902_v11 }
  0x86   :  { %v906_v18 = vsub.s32 %v903_v37, %v1433_v32 }
  0x87   :  { %1188 = vmatpush3.bf16.msra.mxu0 %v1273_v63 }
 0x116   :  { %v1087_v34 = vpop.f32.mrf.mxu0 }
 0x118   :  { %v1088_v35 = vpop.f32.mrf.mxu0  ;;  %v1109_v36 = vpop.f32.mrf.mxu1 }
 0x119   :  { %v1089_v42 = vadd.f32 %v1088_v35, %v1087_v34 }
 0x11a   :  { %v1090_v38 = vpop.f32.mrf.mxu0  ;;  %v1110_v39 = vpop.f32.mrf.mxu1 }
 0x11b   :  { %v580_v46 = vadd.f32 %v1089_v42, %v1009_v43  ;;  %v1111_v47 = vadd.f32 %v1110_v39, %v1109_v36 }
 0x11c   :  { %v1091_v40 = vpop.f32.mrf.mxu0  ;;  %v1112_v41 = vpop.f32.mrf.mxu1 }
 0x11d   :  { %v1092_v44 = vadd.f32 %v1091_v40, %v1090_v38  ;;  %v621_v51 = vadd.f32 %v1111_v47, %v580_v46 }
 0x11e   :  { %v1113_v45 = vpop.f32.mrf.mxu1 }
 0x11f   :  { %v583_v48 = vadd.f32 %v1092_v44, %v1009_v43  ;;  %v1114_v49 = vadd.f32 %v1113_v45, %v1112_v41 }
 0x121   :  { %v624_v54 = vadd.f32 %v1114_v49, %v583_v48 }
 0x12a   :  { %v661_v50 = vpop.f32.mrf.mxu0 }
 0x12b   :  { %v662_v53 = vadd.f32 %v661_v50, %v621_v51 }
 0x12c   :  { %v1151_v52 = vpop.f32.mrf.mxu0 }
 0x12d   :  { %v668_v58 = vmax.f32 %v662_v53, 0.0 }
 0x12e   :  { %v664_v55 = vpop.f32.mrf.mxu0 }
 0x12f   :  { %v665_v56 = vadd.f32 %v664_v55, %v624_v54 }
 0x130   :  { %v1152_v57 = vpop.f32.mrf.mxu0 }
 0x131   :  { %v669_v59 = vmax.f32 %v665_v56, 0.0 }
 0x133   :  { %v670_v60 = vpack.c.bf16 %v669_v59, %v668_v58 }
 0x135   :  { %1170 = vmatmul.mubr.bf16.vlgmr.msra.gmra.mxu1 %v670_v60 }
 0x1f5   :  { %v776_v1 = vpop.f32.mrf.mxu1 }
 0x1f6   :  { %v777_v3 = vadd.f32 %v1048_v0, %v776_v1 }
 0x1f7   :  { %v1171_v2 = vpop.f32.mrf.mxu1 }
 0x1f8   :  { %v783_v7 = vmax.f32 %v777_v3, 0.0 }
 0x1f9   :  { %v779_v4 = vpop.f32.mrf.mxu1 }
 0x1fa   :  { %v780_v5 = vadd.f32 %v1048_v0, %v779_v4 }
 0x1fb   :  { %v1172_v6 = vpop.f32.mrf.mxu1 }
 0x1fc   :  { %v784_v8 = vmax.f32 %v780_v5, 0.0 }
 0x1fe   :  { %v785_v9 = vpack.c.bf16 %v784_v8, %v783_v7 }
 0x200   :  { %1190 = vmatmul.mubr.bf16.vlgmr.msra.gmra.mxu0 %v785_v9 }
 0x2c0   :  { %v891_v12 = vpop.f32.mrf.mxu0 }
 0x2c1   :  { %v892_v16 = vadd.f32 %v1057_v13, %v891_v12 }
 0x2c2   :  { %v1191_v14 = vpop.f32.mrf.mxu0 }
 0x2c4   :  { %v894_v15 = vpop.f32.mrf.mxu0 }
 0x2c5   :  { %v895_v17 = vadd.f32 %v1057_v13, %v894_v15 }
 0x2c6   :  { %v1192_v19 = vpop.f32.mrf.mxu0 }
 0x2c7   :  { %v898_v20 = vpack.c.bf16 %v895_v17, %v892_v16 }
 0x2c9   :  { %v907_v21 = vrot.slane %v898_v20, %v906_v18 }
 0x2cb   :  { %1067 = vst.sshfl [vmem:[#allocation9] sm:$0x1 pattern:$0x73625140] %v907_v21 }
 0x2d2   :  { %v983_v22 = vld [vmem:[#allocation9] sm:$0x1] }
 0x2d3   :  { %984 = vst [vmem:[%s1498_s7] sm:$0x1] %v983_v22 }
 0x2d4   :  { %1002 = vsyncpa [#allocation3], 1 }
 0x2d5   :  { %1003 = vsyncpa [#allocation5], 1 }
 0x2d6   :  { %1004 = vsyncpa [#allocation8], 1 }

</bundles_post_ra>
